<compile_context>
chip_gen: v5e
topology: v5e:2x2
jax: 0.10.0
libtpu: 0.0.40
codegen_flags: <defaults>
</compile_context>

<pallas_src>
import jax
import jax.numpy as jnp
from jax import lax
from jax.experimental import pallas as pl
from jax.experimental.pallas import tpu as pltpu


def _round_up(x, m):
    return (x + m - 1) // m * m


# ---------------------------------------------------------------------------
# Pass 1: per-view sums of tanh(z @ W1 + b1), accumulated over nodes.
# ---------------------------------------------------------------------------
def _view_sum_kernel(z_ref, w1_ref, b1_ref, part_ref):
    """grid = (chunk [parallel], node-step [arbitrary / reduction]).

    z_ref   : (tile_n * M, D)  lane-dense rows; row r = (node r//M, view r%M)
    w1_ref  : (D, H)           first Linear weight (z.dtype)
    b1_ref  : (1, H)  f32      first Linear bias
    part_ref: (M, H)  f32      this chunk's running per-view sum (output block,
                               resident across the inner reduction axis)
    """
    @pl.when(pl.program_id(1) == 0)
    def _init():
        part_ref[...] = jnp.zeros_like(part_ref)

    # One dense MXU matmul for the whole tile; bias add (VPU) + tanh (EUP).
    h = jnp.tanh(
        jnp.dot(z_ref[...], w1_ref[...], preferred_element_type=jnp.float32)
        + b1_ref[...]
    )  # (tile_n * M, H) f32

    # Per-view group-sum as a skinny selector matmul; the 0/1 selector is built
    # in-kernel (iota + compare = free VPU filler in this DMA-bound pass).
    m_views = part_ref.shape[0]
    rows = h.shape[0]
    col_view = lax.broadcasted_iota(jnp.int32, (m_views, rows), 1) % m_views
    row_view = lax.broadcasted_iota(jnp.int32, (m_views, rows), 0)
    g = (col_view == row_view).astype(jnp.float32)           # (M, rows)
    part_ref[...] += jnp.dot(g, h, preferred_element_type=jnp.float32)


# ---------------------------------------------------------------------------
# Pass 2: out[n, :] = sum_m beta[m] * z[n, m, :]  as a VPU multiply-accumulate.
# ---------------------------------------------------------------------------
def _weighted_sum_kernel(beta_ref, zf_ref, out_ref):
    """beta_ref: (1, M) f32 in SMEM; zf_ref: (tile_n, M*D); out_ref: (tile_n, D)."""
    d = out_ref.shape[-1]
    m_views = zf_ref.shape[-1] // d
    acc = beta_ref[0, 0] * zf_ref[:, 0:d].astype(jnp.float32)
    for m in range(1, m_views):                      # static unroll over views
        acc = acc + beta_ref[0, m] * zf_ref[:, m * d:(m + 1) * d].astype(jnp.float32)
    out_ref[...] = acc.astype(out_ref.dtype)


def _choose_tile(n, bytes_per_node, max_block_bytes):
    """Nodes per block: multiple of 8 (keeps every block dim (8,128)-legal),
    bounded by the per-buffer VMEM budget and by (rounded-up) N."""
    cap = max(8, (max_block_bytes // max(1, bytes_per_node)) // 8 * 8)
    return max(8, min(cap, _round_up(n, 8)))


def agg_attention(z, w1, b1, w2, *, tile_n_beta=None, tile_n_out=None,
                  max_block_bytes=4 * 1024 * 1024):
    """z: (N, M, D); w1: (D, H); b1: (1, H); w2: (H, 1).
    Returns (out (N, D) in z.dtype, beta (M, 1) f32)."""
    N, M, D = z.shape
    H = w1.shape[1]
    assert w1.shape == (D, H) and b1.shape == (1, H) and w2.shape == (H, 1)

    f32 = jnp.float32
    bytes_per_node = M * D * z.dtype.itemsize

    tile1 = tile_n_beta if tile_n_beta is not None else _choose_tile(N, bytes_per_node, max_block_bytes)
    tile1 = max(8, _round_up(tile1, 8))
    tile2 = tile_n_out if tile_n_out is not None else _choose_tile(N, bytes_per_node, max_block_bytes)
    tile2 = max(8, _round_up(tile2, 8))

    # Mixed precision: matmul operands in z.dtype (bf16-native MXU path when z is
    # bf16); bias / accumulation / softmax always f32.
    w1c = w1.astype(z.dtype)
    b1f = b1.astype(f32)
    w2f = w2.astype(f32)

    # Legal on v5e/v6e/v7x (v7x has only 64 MiB physical VMEM); z blocks are capped
    # at max_block_bytes so double-buffering stays well inside this.
    vmem_limit = 48 * 1024 * 1024

    # ------------------- pass 1: per-view sums over nodes --------------------
    n_tiles1 = pl.cdiv(N, tile1)
    n_chunks = 2 if n_tiles1 >= 2 else 1   # split reduction across the 2 TCs on v7x
    steps = pl.cdiv(n_tiles1, n_chunks)
    n_pad1 = n_chunks * steps * tile1
    pad1 = n_pad1 - N

    z2d = z.reshape(N * M, D)              # node-major / view-minor rows, D on lanes
    if pad1:
        z2d = jnp.pad(z2d, ((0, pad1 * M), (0, 0)))

    cost1 = pl.CostEstimate(
        flops=int(2 * n_pad1 * M * H * (D + M)),
        transcendentals=int(n_pad1 * M * H),
        bytes_accessed=int(n_pad1 * M * D * z.dtype.itemsize
                           + D * H * z.dtype.itemsize + 4 * H
                           + 4 * n_chunks * M * H),
    )
    partials = pl.pallas_call(
        _view_sum_kernel,
        out_shape=jax.ShapeDtypeStruct((n_chunks, M, H), f32),
        grid=(n_chunks, steps),
        in_specs=[
            pl.BlockSpec((tile1 * M, D), lambda c, i: (c * steps + i, 0)),
            # TODO(synk): single-buffer these constant-index-map operands
            # (pipeline_mode=pl.Buffered(1)) on JAX versions that support it.
            pl.BlockSpec((D, H), lambda c, i: (0, 0)),
            pl.BlockSpec((1, H), lambda c, i: (0, 0)),
        ],
        out_specs=pl.BlockSpec((None, M, H), lambda c, i: (c, 0, 0)),
        compiler_params=pltpu.CompilerParams(
            dimension_semantics=("parallel", "arbitrary"),
            vmem_limit_bytes=vmem_limit,
        ),
        cost_estimate=cost1,
    )(z2d, w1c, b1f)

    # -------- finalize beta: O(M*H) combine + softmax, done in the wrapper ----
    sums = partials.sum(axis=0)                          # (M, H)
    if pad1:
        # Each padded (all-zero) node contributed tanh(b1) per view; remove exactly.
        sums = sums - pad1 * jnp.tanh(b1f)
    hbar = sums / N                                      # mean over the true N nodes
    scores = hbar @ w2f                                  # (M, 1)
    beta = jax.nn.softmax(scores, axis=0)                # (M, 1)
    # TODO(synk): the module's in-forward `print(beta)` (host-side debug print) is
    # intentionally omitted; beta is returned instead.

    # -------- pass 2: out[n, :] = sum_m beta[m] * z[n, m, :]  (VPU MAC) -------
    n_tiles2 = pl.cdiv(N, tile2)
    n_pad2 = n_tiles2 * tile2
    pad2 = n_pad2 - N

    zf = z.reshape(N, M * D)                             # fully lane-dense slab
    if pad2:
        zf = jnp.pad(zf, ((0, pad2), (0, 0)))

    cost2 = pl.CostEstimate(
        flops=int(2 * n_pad2 * M * D),
        transcendentals=0,
        bytes_accessed=int(n_pad2 * M * D * z.dtype.itemsize
                           + n_pad2 * D * z.dtype.itemsize + 4 * M),
    )
    out = pl.pallas_call(
        _weighted_sum_kernel,
        out_shape=jax.ShapeDtypeStruct((n_pad2, D), z.dtype),
        grid=(n_tiles2,),
        in_specs=[
            pl.BlockSpec(memory_space=pltpu.MemorySpace.SMEM),   # beta: M scalars
            pl.BlockSpec((tile2, M * D), lambda i: (i, 0)),
        ],
        out_specs=pl.BlockSpec((tile2, D), lambda i: (i, 0)),
        compiler_params=pltpu.CompilerParams(
            dimension_semantics=("parallel",),
            vmem_limit_bytes=vmem_limit,
        ),
        cost_estimate=cost2,
    )(beta.reshape(1, M).astype(f32), zf)

    if pad2:
        out = out[:N]
    return out, beta


def agg_attention_ref(z, w1, b1, w2):
    """Plain JAX reference mirroring the PyTorch module."""
    h = jnp.tanh(jnp.einsum('nmd,dh->nmh', z, w1) + b1[None, :, :])
    s = jnp.einsum('nmh,hk->nmk', h, w2)          # (N, M, 1)
    w = jnp.mean(s, axis=0)                        # (M, 1)
    beta = jax.nn.softmax(w, axis=0)               # (M, 1)
    out = jnp.sum(beta[None, :, :] * z, axis=1)    # (N, D)
    return out, beta


if __name__ == "__main__":
    # N nodes, M views (meta-paths), D = in_size, H = hidden_size.
    # N is deliberately NOT a tile multiple so the padding/correction path runs.
    N, M, D, H = 20, 4, 32, 32

    key = jax.random.PRNGKey(0)
    k_z, k_w1, k_b1, k_w2 = jax.random.split(key, 4)

    z = jax.random.normal(k_z, (N, M, D), dtype=jnp.float32)

    # Parameter init mimicking torch.nn.Linear defaults (uniform +-1/sqrt(fan_in)).
    bound1 = 1.0 / (D ** 0.5)
    w1 = jax.random.uniform(k_w1, (D, H), jnp.float32, -bound1, bound1)   # Linear(D,H).weight^T
    b1 = jax.random.uniform(k_b1, (1, H), jnp.float32, -bound1, bound1)   # Linear(D,H).bias
    bound2 = 1.0 / (H ** 0.5)
    w2 = jax.random.uniform(k_w2, (H, 1), jnp.float32, -bound2, bound2)   # Linear(H,1,bias=False).weight^T

    # tile 8 -> pass-1 grid = (2 chunks x 2 reduction steps, incl. padded nodes),
    # pass-2 grid = 3 parallel node tiles: exercises accumulation, chunk split and padding.
    out, beta = agg_attention(z, w1, b1, w2, tile_n_beta=8, tile_n_out=8)
    jax.block_until_ready(out)
    jax.block_until_ready(beta)

    out_ref, beta_ref_v = agg_attention_ref(z, w1, b1, w2)
    assert jnp.allclose(out, out_ref, atol=1e-4, rtol=1e-4), "out mismatch"
    assert jnp.allclose(beta, beta_ref_v, atol=1e-4, rtol=1e-4), "beta mismatch"
    print("KERNEL_OK")
</pallas_src>

<mosaic_0001>
module attributes {stable_mosaic.version = 11 : i64} {
  func.func @_view_sum_kernel(%arg0: i32, %arg1: i32, %arg2: memref<32x32xf32, #tpu.memory_space<vmem>>, %arg3: memref<32x32xf32, #tpu.memory_space<vmem>>, %arg4: memref<1x32xf32, #tpu.memory_space<vmem>>, %arg5: memref<1x4x32xf32, #tpu.memory_space<vmem>>) attributes {dimension_semantics = [#tpu.dimension_semantics<parallel>, #tpu.dimension_semantics<arbitrary>], iteration_bounds = array<i64: 2, 2>, scalar_prefetch = 0 : i64, scratch_operands = 0 : i64, tpu.core_type = #tpu.core_type<tc>, window_params = [{transform_indices = @transform_0, window_bounds = array<i64: 32, 32>}, {pipeline_mode = #tpu.pipeline_mode<synchronous>, transform_indices = @transform_1, window_bounds = array<i64: 32, 32>}, {pipeline_mode = #tpu.pipeline_mode<synchronous>, transform_indices = @transform_2, window_bounds = array<i64: 1, 32>}, {transform_indices = @transform_3, window_bounds = array<i64: 1, 4, 32>}]} {
    %c0_i32 = arith.constant 0 : i32
    %0 = arith.cmpi eq, %arg1, %c0_i32 : i32
    %1 = arith.extui %0 : i1 to i32
    %c0_i32_0 = arith.constant 0 : i32
    %2 = arith.cmpi ne, %1, %c0_i32_0 : i32
    scf.if %2 {
      %cst_17 = arith.constant 0.000000e+00 : f32
      %38 = vector.broadcast %cst_17 : f32 to vector<4x32xf32>
      %c0_18 = arith.constant 0 : index
      %c0_19 = arith.constant 0 : index
      %c0_20 = arith.constant 0 : index
      %39 = vector.load %arg5[%c0_18, %c0_19, %c0_20] : memref<1x4x32xf32, #tpu.memory_space<vmem>>, vector<1x4x32xf32>
      %40 = vector.shape_cast %39 : vector<1x4x32xf32> to vector<4x32xf32>
      %41 = vector.shape_cast %38 : vector<4x32xf32> to vector<1x4x32xf32>
      tpu.vector_store %arg5[%c0_18, %c0_19, %c0_20], %41 {strides = array<i32>} : memref<1x4x32xf32, #tpu.memory_space<vmem>>, vector<1x4x32xf32>,
    } else {
    }
    %c0 = arith.constant 0 : index
    %c0_1 = arith.constant 0 : index
    %3 = vector.load %arg2[%c0, %c0_1] : memref<32x32xf32, #tpu.memory_space<vmem>>, vector<32x32xf32>
    %c0_2 = arith.constant 0 : index
    %c0_3 = arith.constant 0 : index
    %4 = vector.load %arg3[%c0_2, %c0_3] : memref<32x32xf32, #tpu.memory_space<vmem>>, vector<32x32xf32>
    %cst = arith.constant dense<0.000000e+00> : vector<32x32xf32>
    %5 = tpu.matmul %3, %4, %cst {dimension_numbers = #tpu.dot_dimension_numbers<[1], [0], [0], [1], [0, 0, 1, 1], [], []>} : vector<32x32xf32>, vector<32x32xf32>, vector<32x32xf32> -> vector<32x32xf32>
    %c0_4 = arith.constant 0 : index
    %c0_5 = arith.constant 0 : index
    %6 = vector.load %arg4[%c0_4, %c0_5] : memref<1x32xf32, #tpu.memory_space<vmem>>, vector<1x32xf32>
    %7 = vector.broadcast %6 : vector<1x32xf32> to vector<32x32xf32>
    %8 = arith.addf %5, %7 : vector<32x32xf32>
    %9 = math.tanh %8 : vector<32x32xf32>
    %10 = tpu.iota {dimensions = array<i32: 1>} : vector<4x32xi32>
    %c4_i32 = arith.constant 4 : i32
    %c0_i32_6 = arith.constant 0 : i32
    %11 = arith.cmpi eq, %c4_i32, %c0_i32_6 : i32
    %c1_i32 = arith.constant 1 : i32
    %12 = arith.select %11, %c1_i32, %c4_i32 : i32
    %13 = vector.broadcast %12 : i32 to vector<4x32xi32>
    %14 = arith.remsi %10, %13 : vector<4x32xi32>
    %c0_i32_7 = arith.constant 0 : i32
    %15 = vector.broadcast %c0_i32_7 : i32 to vector<4x32xi32>
    %16 = arith.cmpi ne, %14, %15 : vector<4x32xi32>
    %c0_i32_8 = arith.constant 0 : i32
    %17 = vector.broadcast %c0_i32_8 : i32 to vector<4x32xi32>
    %18 = arith.cmpi slt, %14, %17 : vector<4x32xi32>
    %c0_i32_9 = arith.constant 0 : i32
    %19 = arith.cmpi slt, %12, %c0_i32_9 : i32
    %20 = vector.broadcast %19 : i1 to vector<4x32xi1>
    %21 = vector.broadcast %20 : vector<4x32xi1> to vector<4x32xi1>
    %22 = arith.xori %18, %21 : vector<4x32xi1>
    %23 = arith.andi %22, %16 : vector<4x32xi1>
    %24 = vector.broadcast %12 : i32 to vector<4x32xi32>
    %25 = arith.addi %14, %24 : vector<4x32xi32>
    %26 = arith.select %23, %25, %14 : vector<4x32xi1>, vector<4x32xi32>
    %27 = tpu.iota {dimensions = array<i32: 0>} : vector<4x32xi32>
    %28 = arith.cmpi eq, %26, %27 : vector<4x32xi32>
    %29 = arith.extui %28 : vector<4x32xi1> to vector<4x32xi32>
    %30 = arith.sitofp %29 : vector<4x32xi32> to vector<4x32xf32>
    %c0_10 = arith.constant 0 : index
    %c0_11 = arith.constant 0 : index
    %c0_12 = arith.constant 0 : index
    %31 = vector.load %arg5[%c0_10, %c0_11, %c0_12] : memref<1x4x32xf32, #tpu.memory_space<vmem>>, vector<1x4x32xf32>
    %32 = vector.shape_cast %31 : vector<1x4x32xf32> to vector<4x32xf32>
    %cst_13 = arith.constant dense<0.000000e+00> : vector<4x32xf32>
    %33 = tpu.matmul %30, %9, %cst_13 {dimension_numbers = #tpu.dot_dimension_numbers<[1], [0], [0], [1], [0, 0, 1, 1], [], []>} : vector<4x32xf32>, vector<32x32xf32>, vector<4x32xf32> -> vector<4x32xf32>
    %34 = arith.addf %32, %33 : vector<4x32xf32>
    %c0_14 = arith.constant 0 : index
    %c0_15 = arith.constant 0 : index
    %c0_16 = arith.constant 0 : index
    %35 = vector.load %arg5[%c0_14, %c0_15, %c0_16] : memref<1x4x32xf32, #tpu.memory_space<vmem>>, vector<1x4x32xf32>
    %36 = vector.shape_cast %35 : vector<1x4x32xf32> to vector<4x32xf32>
    %37 = vector.shape_cast %34 : vector<4x32xf32> to vector<1x4x32xf32>
    tpu.vector_store %arg5[%c0_14, %c0_15, %c0_16], %37 {strides = array<i32>} : memref<1x4x32xf32, #tpu.memory_space<vmem>>, vector<1x4x32xf32>,
    return
  }
  func.func @transform_0(%arg0: i32, %arg1: i32) -> (i32, i32) {
    %c2_i32 = arith.constant 2 : i32
    %0 = arith.muli %arg0, %c2_i32 : i32
    %1 = arith.addi %0, %arg1 : i32
    %c0_i32 = arith.constant 0 : i32
    %c0_i32_0 = arith.constant 0 : i32
    return %1, %c0_i32 : i32, i32
  }
  func.func @transform_1(%arg0: i32, %arg1: i32) -> (i32, i32) {
    %c0_i32 = arith.constant 0 : i32
    %c0_i32_0 = arith.constant 0 : i32
    %c0_i32_1 = arith.constant 0 : i32
    return %c0_i32, %c0_i32_0 : i32, i32
  }
  func.func @transform_2(%arg0: i32, %arg1: i32) -> (i32, i32) {
    %c0_i32 = arith.constant 0 : i32
    %c0_i32_0 = arith.constant 0 : i32
    %c0_i32_1 = arith.constant 0 : i32
    return %c0_i32, %c0_i32_0 : i32, i32
  }
  func.func @transform_3(%arg0: i32, %arg1: i32) -> (i32, i32, i32) {
    %c0_i32 = arith.constant 0 : i32
    %c0_i32_0 = arith.constant 0 : i32
    %c0_i32_1 = arith.constant 0 : i32
    return %arg0, %c0_i32, %c0_i32_0 : i32, i32, i32
  }
}

</mosaic_0001>

<bundles_post_ra>
// kernel: tpu_custom_call.1
= control target key start
LH: loop header
LB: loop body
LE: loop exit
PB: predicated region body
PF: predicated region fallthrough
CT: control target
= control target key end

     0   :  { %8 = vsyncpa [#allocation3], 0  ;;  %s777_s0 = inlined_call_operand.vmem [shape: f32[128,32], index: 0, kind: input, shape index: {}]   ;;  %s778_s1 = inlined_call_operand.vmem [shape: f32[32,32], index: 1, kind: input, shape index: {}]   ;;  %s779_s2 = inlined_call_operand.vmem [shape: f32[1,32], index: 2, kind: input, shape index: {}]   ;;  %s780_s3 = inlined_call_operand.hbm [shape: f32[2,4,32], index: 3, kind: output, shape index: {}]  }
   0x1   :  { %10 = vsyncpa [#allocation3 + $0x1], 0  ;;  %s623_s12 = smov 0   ;;  %s625_s13 = smov 0  }
   0x2   :  { %s627_s14 = smov 0   ;;  %s629_s15 = smov 0  }
   0x3   :  { %s631_s16 = smov 0   ;;  %s633_s17 = smov 0  }
   0x4   :  { %s635_s18 = smov 0   ;;  %s637_s19 = smov 0  }
   0x5 LB: > { %s393_s20 = sadd.s32 4294967295, %s599_s19   ;;  %s394_s21 = sadd.s32 4294967294, %s599_s19   ;;  %s599_s19 = sphi %s637_s19, %s16_s19   ;;  %s595_s18 = sphi %s635_s18, %s789_s18   ;;  %s591_s17 = sphi %s633_s17, %s788_s17   ;;  %s587_s16 = sphi %s631_s16, %s787_s16   ;;  %s583_s15 = sphi %s629_s15, %s786_s15   ;;  %s579_s14 = sphi %s627_s14, %s785_s14   ;;  %s575_s13 = sphi %s625_s13, %s784_s13   ;;  %s571_s12 = sphi %s623_s12, %s783_s12  }
   0x6   : > { %s25_s22 = sadd.s32 1, %s591_s17  ;;  %s28_s23 = sadd.s32 1, %s595_s18 }
   0x7   : > { %p26_p0 = scmp.ge.s32.totalorder %s25_s22, 2  ;;  %p117_p1 = scmp.ne.s32.totalorder %s579_s14, %s575_s13 }
   0x8   : > { %p118_p2 = scmp.eq.s32.totalorder %s393_s20, 3  ;;  %p123_p4 = scmp.ne.s32.totalorder %s575_s13, %s571_s12 }
   0x9   : > { %s791_s22 = smov (%p26_p0, %s25_s22), 0  ;;  %s793_s23 = smov (!%p26_p0, %s28_s23), %s595_s18 }
   0xa   : > { %p672_p3 = por %p118_p2, %p117_p1  ;;  %p30_p5 = scmp.ge.s32.totalorder %s793_s23, 2 }
   0xb   : > { %p124_p6 = scmp.eq.s32.totalorder %s394_s21, 3  ;;  %p399_p7 = scmp.ge.s32.totalorder %s599_s19, 1 }
   0xc   : > { %p161_p8 = scmp.lt.s32.totalorder %s599_s19, 5  ;;  %s795_s23 = smov (%p30_p5, %s793_s23), 0 }
   0xd   : > { %p682_p9 = por %p124_p6, %p123_p4  ;;  %s104_s26 = ssub.s32 %s595_s18, %s795_s23 }
   0xe   : > { %p162_p10 = pnand %p399_p7, %p161_p8  ;;  %s107_s27 = sadd.s32 1, %s579_s14 }
   0xf   : > { %p105_p11 = scmp.eq.s32.totalorder %s104_s26, 0  ;;  %s184_s29 = sand.u32 (!%p162_p10), 1, %s575_s13  }
  0x10   : > { %165 = sbr.rel (%p162_p10) target bundleno = 324 (0x144), region = 32  ;;  %s401_s30 = sshll.u32 (!%p162_p10), %s587_s16, 1 }
  0x11   : > { %s690_s28 = scalar_select %p105_p11, %s579_s14, %s107_s27  }
  0x12   : > { %s400_s4 = sshll.u32 (!%p162_p10), %s184_s29, 2  ;;  %s188_s5 = sadd.s32 (!%p162_p10), %s583_s15, %s401_s30 }
  0x13   : > { %s402_s6 = sshll.u32 (!%p162_p10), %s188_s5, 2  ;;  %s702_s11 = scalar_lea.vmem (!%p162_p10), [#allocation2], %s400_s4 }
  0x14   : > { %p190_p12 = scmp.lt.s32.totalorder (!%p162_p10), %s402_s6, 15  ;;  %p404_p13 = scmp.ne.s32.totalorder (!%p162_p10), %s583_s15, 0 }
  0x16   : > { %s797_s6 = smov (!%p190_p12, %s402_s6), 15  ;;  %200 = sbr.rel (%p404_p13) target bundleno = 29 (0x1d), region = 36 }
  0x17   : > { %s403_s7 = sshll.u32 %s797_s6, 3 }
  0x18   : > { %s700_s10 = scalar_lea.vmem %s777_s0, %s403_s7 }
  0x1b   : > { %vm201_vm0 = vcmask 257024   ;;  %v601_v0 = vmov 0.0  }
  0x1c   : > { %202 = vst.msk [vmem:[%s702_s11] sm:$0xf] %vm201_vm0, %v601_v0 }
  0x1d PF: > { %v210_v1 = vld [vmem:[%s778_s1 + $0x18] sm:$0xff]  ;;  %v209_v2 = vld [vmem:[%s778_s1 + $0x10] sm:$0xff]  ;;  %v208_v3 = vld [vmem:[%s778_s1 + $0x8] sm:$0xff]  ;;  %vm215_vm1 = vcmask 261120   ;;  %v261_v12 = vlaneseq  ;;  %v602_v26 = vmov 0.0   ;;  %s412_s8 = sshll.u32 %s587_s16, 2 }
  0x1e   : > { %416 = vmatpush.msra.mxu3 %v210_v1  ;;  %415 = vmatpush.msra.mxu2 %v210_v1  ;;  %v207_v4 = vld [vmem:[%s778_s1] sm:$0xff]  ;;  %v205_v5 = vld [vmem:[%s700_s10 + $0x10] sm:$0xff]  ;;  %v204_v6 = vld [vmem:[%s700_s10 + $0x8] sm:$0xff]  ;;  %s318_s20 = scalar_lea.hbm %s780_s3, %s412_s8  ;;  %s320_s21 = sshll.u32 %s702_s11, 4  ;;  %vm305_vm3 = vcmask 257024   ;;  %s321_s21 = int_to_ptr.vmem [resolvable:$true] %s320_s21 }
  0x1f   : > { %240 = vmatpush.msra.mxu0 %v210_v1  ;;  %v203_v7 = vld [vmem:[%s700_s10] sm:$0xff]  ;;  %v206_v8 = vld [vmem:[%s700_s10 + $0x18] sm:$0xff]  ;;  %v262_v19 = vand.u32 127, %v261_v12  ;;  %v276_v21 = vshrl.u32 %v261_v12, 7  ;;  %s322_s26 = sshll.u32 %s318_s20, 4  ;;  %s308_s27 = scalar_lea.sflag [#allocation3], %s184_s29  ;;  %s323_s26 = int_to_ptr.hbm [resolvable:$true] %s322_s26 }
  0x20   : > { %418 = vmatpush.msra.mxu3 %v209_v2  ;;  %417 = vmatpush.msra.mxu2 %v209_v2  ;;  %v496_v10 = vld [vmem:[%s779_s2] ss:$0 sm:$0xff]  ;;  %s519_s15 = sshra.s32 %s323_s26, 4  ;;  %s525_s5 = scalar_lea.hbm %s780_s3, 8  ;;  %s520_s15 = int_to_ptr.hbm [resolvable:$true] %s519_s15 }
  0x21   : > { %241 = vmatpush.msra.mxu0 %v209_v2  ;;  %v267_v20 = vand.u32 3, %v262_v19  ;;  %s521_s30 = scalar_lea.hbm %s520_s15, 4  ;;  %p526_p4 = scmp.lt.s32.totalorder %s520_s15, %s780_s3 }
  0x22   : > { %420 = vmatpush.msra.mxu3 %v208_v3  ;;  %419 = vmatpush.msra.mxu2 %v208_v3  ;;  %p522_p0 = scmp.ne.s32.totalorder %s520_s15, %s521_s30  ;;  %p527_p5 = scmp.lt.s32.totalorder %s525_s5, %s521_s30 }
  0x23   : > { %242 = vmatpush.msra.mxu0 %v208_v3  ;;  %vm277_vm2 = vcmp.eq.s32.totalorder %v267_v20, %v276_v21  ;;  %v280_v28 = vld [vmem:[%s702_s11] sm:$0xf] }
  0x24   : > { %422 = vmatpush.msra.mxu3 %v207_v4  ;;  %421 = vmatpush.msra.mxu2 %v207_v4  ;;  %v409_v27 = vsel %vm277_vm2, 1.0, %v602_v26  ;;  %p523_p1 = pnand %p522_p0, %p672_p3  ;;  %p528_p6 = por %p527_p5, %p526_p4 }
  0x25   : > { %407 = vmatmul.msk.f32.vlgmr.msra.gmra.mxu3 %vm215_vm1, %v205_v5  ;;  %406 = vmatmul.msk.f32.vlgmr.msra.gmra.mxu2 %vm215_vm1, %v204_v6 }
  0x26   : > { %243 = vmatpush.msra.mxu0 %v207_v4  ;;  %p524_p2 = pneg %p523_p1 }
  0x27   : > { %405 = vmatmul.msk.f32.vlgmr.msra.gmra.mxu0 %vm215_vm1, %v203_v7 }
  0x28   : > { %p529_p7 = pnand %p528_p6, %p524_p2 }
  0x2d   : > { %408 = vmatmul.msk.f32.gmra.mxu3 %vm215_vm1, %v206_v8 }
  0xa4   : > { %v245_v15 = vpop.f32.mrf.mxu0 }
  0xa5   : > { %v246_v18 = vadd.f32 %v496_v10, %v245_v15 }
  0xa8   : > { %v251_v9 = vpop.f32.mrf.mxu3  ;;  %v248_v11 = vpop.f32.mrf.mxu2 }
  0xa9   : > { %v252_v13 = vadd.f32 %v496_v10, %v251_v9  ;;  %v249_v17 = vadd.f32 %v496_v10, %v248_v11 }
  0xb0   : > { %v254_v14 = vpop.f32.mrf.mxu3 }
  0xb1   : > { %v255_v16 = vadd.f32 %v496_v10, %v254_v14 }
  0xb3   : > { %497 = vtanh.f32 %v255_v16 }
  0xb4   : > { %499 = vtanh.f32 %v252_v13 }
  0xb5   : > { %501 = vtanh.f32 %v249_v17 }
  0xb6   : > { %503 = vtanh.f32 %v246_v18 }
  0xb9   : > { %v498_v22 = vpop.eup %497 }
  0xba   : > { %v500_v23 = vpop.eup %499  ;;  %296 = vmatpush.msra.mxu1 %v498_v22 }
  0xbb   : > { %v502_v24 = vpop.eup %501 }
  0xbc   : > { %297 = vmatpush.msra.mxu1 %v500_v23  ;;  %v504_v25 = vpop.eup %503 }
  0xbe   : > { %298 = vmatpush.msra.mxu1 %v502_v24 }
  0xc0   : > { %299 = vmatpush.msra.mxu1 %v504_v25 }
  0xc1   : > { %410 = vmatmul.msk.f32.vlgmr.msra.gmra.mxu1 %vm215_vm1, %v409_v27 }
 0x13e   : > { %v301_v29 = vpop.f32.mrf.mxu1 }
 0x13f   : > { %v304_v30 = vadd.f32 %v301_v29, %v280_v28 }
 0x141   : > { %306 = vst.msk [vmem:[%s702_s11] sm:$0xf] %vm305_vm3, %v304_v30 }
 0x142   : > { %532 = shalt.err (!%p529_p7)
}
 0x143   : > { %423 = dma.vmem_to_hbm [thread:$0]  (%p672_p3), %s321_s21, 64, %s323_s26, %s308_s27  }
 0x144 PF: > { %p429_p8 = scmp.ge.s32.totalorder %s599_s19, 2  ;;  %s334_s29 = sand.u32 1, %s571_s12  }
 0x145   : > { %s335_s11 = scalar_lea.sflag [#allocation3], %s334_s29 }
 0x146   : > { %p426_p10 = pnand %p429_p8, %p682_p9 }
 0x148   : > { %p427_p11 = pneg %p426_p10 }
 0x14a   : > { %566 = dma.done.wait (%p427_p11), %s335_s11, 64  }
 0x14b   : > { %568 = vsyncadd (%p427_p11), %s335_s11, 4294967232  ;;  %s16_s19 = sadd.s32 1, %s599_s19   ;;  %s783_s12 = smov %s575_s13 }
 0x14c   : > { %p13_p12 = scmp.ge.s32.totalorder %s16_s19, 6   ;;  %s784_s13 = smov %s579_s14 }
 0x14d   : > { %s785_s14 = smov %s690_s28  ;;  %s786_s15 = smov %s591_s17 }
 0x14e   : > { %s787_s16 = smov %s595_s18  ;;  %s788_s17 = smov %s791_s22 }
 0x14f   : > { %s789_s18 = smov %s795_s23  ;;  %15 = sbr.rel (!%p13_p12) target bundleno = 5 (0x5), region = 71 }
 0x154   :  { %341 = vsyncpa [#allocation3], 1 }
 0x155   :  { %343 = vsyncpa [#allocation3 + $0x1], 1 }

</bundles_post_ra>
